<compile_context>
chip_gen: v7x
topology: tpu7x:2x2x1
jax: 0.10.0
libtpu: 0.0.40
codegen_flags: <defaults>
</compile_context>

<pallas_src>
import functools

import jax
import jax.numpy as jnp
from jax.experimental import pallas as pl
from jax.experimental.pallas import tpu as pltpu


def mlp_kernel(x_ref, w1_ref, b1_ref, w2_ref, b2_ref, w3_ref, b3_ref, o_ref):
    """Fused 3-layer MLP: (Linear -> ReLU) x2 -> Linear, all in VMEM.

    x/weights are bf16 (MXU-friendly); accumulation, bias add and ReLU in f32.
    """
    x = x_ref[...]  # (block_b, in) bf16

    # l1 + ReLU (f32 accumulate, f32 bias/activation)
    h1 = jnp.dot(x, w1_ref[...], preferred_element_type=jnp.float32)
    h1 = jnp.maximum(h1 + b1_ref[...], 0.0)
    h1 = h1.astype(jnp.bfloat16)

    # l2 + ReLU
    h2 = jnp.dot(h1, w2_ref[...], preferred_element_type=jnp.float32)
    h2 = jnp.maximum(h2 + b2_ref[...], 0.0)
    h2 = h2.astype(jnp.bfloat16)

    # l3 (no activation); output last dim is padded to a multiple of 128, so
    # this store is lane-dense (unmasked vst).
    out = jnp.dot(h2, w3_ref[...], preferred_element_type=jnp.float32) + b3_ref[...]
    o_ref[...] = out.astype(o_ref.dtype)


@functools.partial(jax.jit, static_argnames=("block_b",))
def neural_net_forward(x, w1_t, b1, w2_t, b2, w3_t, b3, *, block_b=256):
    """Pallas-fused forward pass of NeuralNet.

    x:     (B, input_size)  float32
    w1_t:  (input_size, hidden)      b1: (1, hidden)
    w2_t:  (hidden, hidden)          b2: (1, hidden)
    w3_t:  (hidden, num_classes)     b3: (1, num_classes)
    returns (B, num_classes) float32
    """
    B, in_size = x.shape
    hidden = w1_t.shape[1]
    num_classes = w3_t.shape[1]

    # --- lane-dense output: pad classes up to a multiple of 128 -------------
    padded_classes = max(128, ((num_classes + 127) // 128) * 128)
    if padded_classes != num_classes:
        w3_t = jnp.pad(w3_t, ((0, 0), (0, padded_classes - num_classes)))
        b3 = jnp.pad(b3, ((0, 0), (0, padded_classes - num_classes)))

    # --- pad batch to a multiple of block_b (no divisibility requirement) ---
    padded_b = ((B + block_b - 1) // block_b) * block_b
    if padded_b != B:
        x = jnp.pad(x, ((0, padded_b - B), (0, 0)))

    # --- bf16 operands for the MXU; biases stay f32 -------------------------
    x_bf = x.astype(jnp.bfloat16)
    w1_bf = w1_t.astype(jnp.bfloat16)
    w2_bf = w2_t.astype(jnp.bfloat16)
    w3_bf = w3_t.astype(jnp.bfloat16)
    b1_f = b1.astype(jnp.float32)
    b2_f = b2.astype(jnp.float32)
    b3_f = b3.astype(jnp.float32)

    grid = (padded_b // block_b,)

    # Batch is tiled across the grid; weights/biases are broadcast (same block
    # every grid step). Non-batch block dims equal the full array dims.
    # Note: the constant operands are left at the default buffer count; their
    # VMEM footprint is tiny at these shapes (sub-tile w2 on K if hidden grows
    # past ~2K, especially on v7x's 64 MiB VMEM).
    in_specs = [
        pl.BlockSpec((block_b, in_size), lambda i: (i, 0)),          # x tile
        pl.BlockSpec((in_size, hidden), lambda i: (0, 0)),           # w1_t
        pl.BlockSpec((1, hidden), lambda i: (0, 0)),                 # b1
        pl.BlockSpec((hidden, hidden), lambda i: (0, 0)),            # w2_t
        pl.BlockSpec((1, hidden), lambda i: (0, 0)),                 # b2
        pl.BlockSpec((hidden, padded_classes), lambda i: (0, 0)),    # w3_t
        pl.BlockSpec((1, padded_classes), lambda i: (0, 0)),         # b3
    ]
    out_spec = pl.BlockSpec((block_b, padded_classes), lambda i: (i, 0))

    flops = 2 * padded_b * (in_size * hidden
                            + hidden * hidden
                            + hidden * padded_classes)
    bytes_accessed = (
        padded_b * in_size * 2                       # x (bf16) in
        + padded_b * padded_classes * 4              # output (f32) out
        + (in_size * hidden + hidden * hidden + hidden * padded_classes) * 2
        + (2 * hidden + padded_classes) * 4          # biases
    )

    out_padded = pl.pallas_call(
        mlp_kernel,
        out_shape=jax.ShapeDtypeStruct((padded_b, padded_classes), jnp.float32),
        grid_spec=pltpu.PrefetchScalarGridSpec(
            num_scalar_prefetch=0,
            grid=grid,
            in_specs=in_specs,
            out_specs=out_spec,
        ),
        compiler_params=pltpu.CompilerParams(
            dimension_semantics=("parallel",),
        ),
        cost_estimate=pl.CostEstimate(
            flops=flops, transcendentals=0, bytes_accessed=bytes_accessed),
    )(x_bf, w1_bf, b1_f, w2_bf, b2_f, w3_bf, b3_f)

    return out_padded[:B, :num_classes]


def reference_forward_bf16(x, w1_t, b1, w2_t, b2, w3_t, b3):
    """Pure-JAX reference mirroring the kernel's bf16 operand casts."""
    xb = x.astype(jnp.bfloat16).astype(jnp.float32)
    w1 = w1_t.astype(jnp.bfloat16).astype(jnp.float32)
    w2 = w2_t.astype(jnp.bfloat16).astype(jnp.float32)
    w3 = w3_t.astype(jnp.bfloat16).astype(jnp.float32)
    h1 = jnp.maximum(xb @ w1 + b1, 0.0)
    h1 = h1.astype(jnp.bfloat16).astype(jnp.float32)
    h2 = jnp.maximum(h1 @ w2 + b2, 0.0)
    h2 = h2.astype(jnp.bfloat16).astype(jnp.float32)
    return h2 @ w3 + b3


if __name__ == "__main__":
    # Small shapes consistent with NeuralNet(input_size, hidden_size, num_classes)
    batch = 8
    input_size = 32
    hidden_size = 64
    num_classes = 16

    key = jax.random.PRNGKey(0)
    kx, k1, k2, k3, kb1, kb2, kb3 = jax.random.split(key, 7)

    x = jax.random.normal(kx, (batch, input_size), dtype=jnp.float32)

    # Deterministic parameter init (PyTorch-Linear-like uniform scale).
    def init_linear(kw, kb, fan_in, fan_out):
        bound = 1.0 / jnp.sqrt(fan_in)
        w_t = jax.random.uniform(kw, (fan_in, fan_out), jnp.float32, -bound, bound)
        b = jax.random.uniform(kb, (1, fan_out), jnp.float32, -bound, bound)
        return w_t, b

    w1_t, b1 = init_linear(k1, kb1, input_size, hidden_size)
    w2_t, b2 = init_linear(k2, kb2, hidden_size, hidden_size)
    w3_t, b3 = init_linear(k3, kb3, hidden_size, num_classes)

    out = neural_net_forward(x, w1_t, b1, w2_t, b2, w3_t, b3)
    out = jax.block_until_ready(out)

    ref = reference_forward_bf16(x, w1_t, b1, w2_t, b2, w3_t, b3)
    assert out.shape == (batch, num_classes)
    assert jnp.allclose(out, ref, atol=1e-3, rtol=1e-3), "mismatch vs reference"

    print("KERNEL_OK")
</pallas_src>

<mosaic_0001>
module attributes {stable_mosaic.version = 11 : i64} {
  func.func @mlp_kernel(%arg0: i32, %arg1: memref<256x32xbf16, #tpu.memory_space<vmem>>, %arg2: memref<32x64xbf16, #tpu.memory_space<vmem>>, %arg3: memref<1x64xf32, #tpu.memory_space<vmem>>, %arg4: memref<64x64xbf16, #tpu.memory_space<vmem>>, %arg5: memref<1x64xf32, #tpu.memory_space<vmem>>, %arg6: memref<64x128xbf16, #tpu.memory_space<vmem>>, %arg7: memref<1x128xf32, #tpu.memory_space<vmem>>, %arg8: memref<256x128xf32, #tpu.memory_space<vmem>>) attributes {dimension_semantics = [#tpu.dimension_semantics<parallel>], iteration_bounds = array<i64: 1>, scalar_prefetch = 0 : i64, scratch_operands = 0 : i64, tpu.core_type = #tpu.core_type<tc>, window_params = [{transform_indices = @transform_0, window_bounds = array<i64: 256, 32>}, {pipeline_mode = #tpu.pipeline_mode<synchronous>, transform_indices = @transform_1, window_bounds = array<i64: 32, 64>}, {pipeline_mode = #tpu.pipeline_mode<synchronous>, transform_indices = @transform_2, window_bounds = array<i64: 1, 64>}, {pipeline_mode = #tpu.pipeline_mode<synchronous>, transform_indices = @transform_3, window_bounds = array<i64: 64, 64>}, {pipeline_mode = #tpu.pipeline_mode<synchronous>, transform_indices = @transform_4, window_bounds = array<i64: 1, 64>}, {pipeline_mode = #tpu.pipeline_mode<synchronous>, transform_indices = @transform_5, window_bounds = array<i64: 64, 128>}, {pipeline_mode = #tpu.pipeline_mode<synchronous>, transform_indices = @transform_6, window_bounds = array<i64: 1, 128>}, {transform_indices = @transform_7, window_bounds = array<i64: 256, 128>}]} {
    %c0 = arith.constant 0 : index
    %c0_0 = arith.constant 0 : index
    %0 = vector.load %arg1[%c0, %c0_0] : memref<256x32xbf16, #tpu.memory_space<vmem>>, vector<256x32xbf16>
    %c0_1 = arith.constant 0 : index
    %c0_2 = arith.constant 0 : index
    %1 = vector.load %arg2[%c0_1, %c0_2] : memref<32x64xbf16, #tpu.memory_space<vmem>>, vector<32x64xbf16>
    %cst = arith.constant dense<0.000000e+00> : vector<256x64xf32>
    %2 = tpu.matmul %0, %1, %cst {dimension_numbers = #tpu.dot_dimension_numbers<[1], [0], [0], [1], [0, 0, 1, 1], [], []>} : vector<256x32xbf16>, vector<32x64xbf16>, vector<256x64xf32> -> vector<256x64xf32>
    %c0_3 = arith.constant 0 : index
    %c0_4 = arith.constant 0 : index
    %3 = vector.load %arg3[%c0_3, %c0_4] : memref<1x64xf32, #tpu.memory_space<vmem>>, vector<1x64xf32>
    %4 = vector.broadcast %3 : vector<1x64xf32> to vector<256x64xf32>
    %5 = arith.addf %2, %4 : vector<256x64xf32>
    %cst_5 = arith.constant 0.000000e+00 : f32
    %6 = vector.broadcast %cst_5 : f32 to vector<256x64xf32>
    %7 = arith.maximumf %5, %6 : vector<256x64xf32>
    %8 = arith.truncf %7 : vector<256x64xf32> to vector<256x64xbf16>
    %c0_6 = arith.constant 0 : index
    %c0_7 = arith.constant 0 : index
    %9 = vector.load %arg4[%c0_6, %c0_7] : memref<64x64xbf16, #tpu.memory_space<vmem>>, vector<64x64xbf16>
    %cst_8 = arith.constant dense<0.000000e+00> : vector<256x64xf32>
    %10 = tpu.matmul %8, %9, %cst_8 {dimension_numbers = #tpu.dot_dimension_numbers<[1], [0], [0], [1], [0, 0, 1, 1], [], []>} : vector<256x64xbf16>, vector<64x64xbf16>, vector<256x64xf32> -> vector<256x64xf32>
    %c0_9 = arith.constant 0 : index
    %c0_10 = arith.constant 0 : index
    %11 = vector.load %arg5[%c0_9, %c0_10] : memref<1x64xf32, #tpu.memory_space<vmem>>, vector<1x64xf32>
    %12 = vector.broadcast %11 : vector<1x64xf32> to vector<256x64xf32>
    %13 = arith.addf %10, %12 : vector<256x64xf32>
    %cst_11 = arith.constant 0.000000e+00 : f32
    %14 = vector.broadcast %cst_11 : f32 to vector<256x64xf32>
    %15 = arith.maximumf %13, %14 : vector<256x64xf32>
    %16 = arith.truncf %15 : vector<256x64xf32> to vector<256x64xbf16>
    %c0_12 = arith.constant 0 : index
    %c0_13 = arith.constant 0 : index
    %17 = vector.load %arg6[%c0_12, %c0_13] : memref<64x128xbf16, #tpu.memory_space<vmem>>, vector<64x128xbf16>
    %cst_14 = arith.constant dense<0.000000e+00> : vector<256x128xf32>
    %18 = tpu.matmul %16, %17, %cst_14 {dimension_numbers = #tpu.dot_dimension_numbers<[1], [0], [0], [1], [0, 0, 1, 1], [], []>} : vector<256x64xbf16>, vector<64x128xbf16>, vector<256x128xf32> -> vector<256x128xf32>
    %c0_15 = arith.constant 0 : index
    %c0_16 = arith.constant 0 : index
    %19 = vector.load %arg7[%c0_15, %c0_16] : memref<1x128xf32, #tpu.memory_space<vmem>>, vector<1x128xf32>
    %20 = vector.broadcast %19 : vector<1x128xf32> to vector<256x128xf32>
    %21 = arith.addf %18, %20 : vector<256x128xf32>
    %c0_17 = arith.constant 0 : index
    %c0_18 = arith.constant 0 : index
    %22 = vector.load %arg8[%c0_17, %c0_18] : memref<256x128xf32, #tpu.memory_space<vmem>>, vector<256x128xf32>
    tpu.vector_store %arg8[%c0_17, %c0_18], %21 {strides = array<i32>} : memref<256x128xf32, #tpu.memory_space<vmem>>, vector<256x128xf32>,
    return
  }
  func.func @transform_0(%arg0: i32) -> (i32, i32) {
    %c0_i32 = arith.constant 0 : i32
    %c0_i32_0 = arith.constant 0 : i32
    return %arg0, %c0_i32 : i32, i32
  }
  func.func @transform_1(%arg0: i32) -> (i32, i32) {
    %c0_i32 = arith.constant 0 : i32
    %c0_i32_0 = arith.constant 0 : i32
    %c0_i32_1 = arith.constant 0 : i32
    return %c0_i32, %c0_i32_0 : i32, i32
  }
  func.func @transform_2(%arg0: i32) -> (i32, i32) {
    %c0_i32 = arith.constant 0 : i32
    %c0_i32_0 = arith.constant 0 : i32
    %c0_i32_1 = arith.constant 0 : i32
    return %c0_i32, %c0_i32_0 : i32, i32
  }
  func.func @transform_3(%arg0: i32) -> (i32, i32) {
    %c0_i32 = arith.constant 0 : i32
    %c0_i32_0 = arith.constant 0 : i32
    %c0_i32_1 = arith.constant 0 : i32
    return %c0_i32, %c0_i32_0 : i32, i32
  }
  func.func @transform_4(%arg0: i32) -> (i32, i32) {
    %c0_i32 = arith.constant 0 : i32
    %c0_i32_0 = arith.constant 0 : i32
    %c0_i32_1 = arith.constant 0 : i32
    return %c0_i32, %c0_i32_0 : i32, i32
  }
  func.func @transform_5(%arg0: i32) -> (i32, i32) {
    %c0_i32 = arith.constant 0 : i32
    %c0_i32_0 = arith.constant 0 : i32
    %c0_i32_1 = arith.constant 0 : i32
    return %c0_i32, %c0_i32_0 : i32, i32
  }
  func.func @transform_6(%arg0: i32) -> (i32, i32) {
    %c0_i32 = arith.constant 0 : i32
    %c0_i32_0 = arith.constant 0 : i32
    %c0_i32_1 = arith.constant 0 : i32
    return %c0_i32, %c0_i32_0 : i32, i32
  }
  func.func @transform_7(%arg0: i32) -> (i32, i32) {
    %c0_i32 = arith.constant 0 : i32
    %c0_i32_0 = arith.constant 0 : i32
    return %arg0, %c0_i32 : i32, i32
  }
}

</mosaic_0001>

<bundles_post_ra>
// kernel: neural_net_forward.1
= control target key start
LH: loop header
LB: loop body
LE: loop exit
PB: predicated region body
PF: predicated region fallthrough
CT: control target
= control target key end

     0   :  { %vm162_vm0 = vcmask 261120   ;;  %vm459_vm1 = vcmask 523264   ;;  %s1661_s1 = inlined_call_operand.vmem [shape: bf16[32,64], index: 1, kind: input, shape index: {}]   ;;  %s1662_s0 = inlined_call_operand.vmem [shape: bf16[256,32], index: 0, kind: input, shape index: {}]   ;;  %s1663_s3 = inlined_call_operand.vmem [shape: bf16[64,64], index: 3, kind: input, shape index: {}]   ;;  %s1664_s5 = inlined_call_operand.vmem [shape: bf16[64,128], index: 5, kind: input, shape index: {}]   ;;  %s1665_s2 = inlined_call_operand.vmem [shape: f32[1,64], index: 2, kind: input, shape index: {}]   ;;  %s1666_s4 = inlined_call_operand.vmem [shape: f32[1,64], index: 4, kind: input, shape index: {}]   ;;  %s1667_s6 = inlined_call_operand.vmem [shape: f32[1,128], index: 6, kind: input, shape index: {}]   ;;  %s1668_s7 = inlined_call_operand.vmem [shape: f32[256,128], index: 7, kind: output, shape index: {}]  }
   0x1   :  { %v1256_v0 = vld [vmem:[%s1661_s1] sm:$0xff]   ;;  %v1257_v1 = vld [vmem:[%s1661_s1 + $0x8] sm:$0xff]   ;;  %v1260_v4 = vld [vmem:[%s1662_s0 + $0x10] sm:$0xff]  }
   0x2   :  { %1136 = vmatprep.subr.bf16.mxu0 %v1256_v0  ;;  %v1258_v2 = vld [vmem:[%s1662_s0] sm:$0xff]   ;;  %1252 = vmatprep.subr.bf16.mxu1 %v1256_v0  ;;  %v1259_v3 = vld [vmem:[%s1662_s0 + $0x8] sm:$0xff]   ;;  %v1268_v7 = vld [vmem:[%s1662_s0 + $0x50] sm:$0xff]  }
   0x3   :  { %1137 = vmatpush3.bf16.msra.mxu0 %v1256_v0  ;;  %1254 = vmatpush3.bf16.msra.mxu1 %v1256_v0  ;;  %v1266_v5 = vld [vmem:[%s1662_s0 + $0x40] sm:$0xff]   ;;  %v1267_v6 = vld [vmem:[%s1662_s0 + $0x48] sm:$0xff]   ;;  %v1261_v8 = vld [vmem:[%s1662_s0 + $0x18] sm:$0xff]  }
   0x4   :  { %1138 = vmatprep.subr.bf16.mxu0 %v1257_v1  ;;  %1140 = vmatprep.mubr.msk.bf16.mxu0 %vm162_vm0, %v1258_v2  ;;  %v1262_v9 = vld [vmem:[%s1662_s0 + $0x20] sm:$0xff]   ;;  %v1269_v10 = vld [vmem:[%s1662_s0 + $0x58] sm:$0xff]   ;;  %v1275_v13 = vld [vmem:[%s1663_s3 + $0x8] sm:$0xff]  }
   0x5   :  { %1253 = vmatprep.subr.bf16.mxu1 %v1257_v1  ;;  %1156 = vmatprep.mubr.msk.bf16.mxu1 %vm162_vm0, %v1266_v5  ;;  %v1270_v11 = vld [vmem:[%s1662_s0 + $0x60] sm:$0xff]   ;;  %v1263_v14 = vld [vmem:[%s1662_s0 + $0x28] sm:$0xff]   ;;  %v1264_v15 = vld [vmem:[%s1662_s0 + $0x30] sm:$0xff]  }
   0x6   :  { %v1274_v12 = vld [vmem:[%s1663_s3] sm:$0xff]   ;;  %v1276_v16 = vld [vmem:[%s1663_s3 + $0x10] sm:$0xff]   ;;  %v1271_v17 = vld [vmem:[%s1662_s0 + $0x68] sm:$0xff]  }
   0x7   :  { %1139 = vmatpush3.bf16.msra.mxu0 %v1257_v1  ;;  %1255 = vmatpush3.bf16.msra.mxu1 %v1257_v1  ;;  %v1272_v18 = vld [vmem:[%s1662_s0 + $0x70] sm:$0xff]   ;;  %v1265_v19 = vld [vmem:[%s1662_s0 + $0x38] sm:$0xff]   ;;  %v1278_v22 = vld [vmem:[%s1664_s5] sm:$0xff]  }
   0x8   :  { %1172 = vmatprep.subr.bf16.mxu1 %v1274_v12  ;;  %v1273_v20 = vld [vmem:[%s1662_s0 + $0x78] sm:$0xff]   ;;  %v1279_v23 = vld [vmem:[%s1664_s5 + $0x8] sm:$0xff]   ;;  %1212 = vmatprep.subr.bf16.mxu0 %v1278_v22  ;;  %v1280_v24 = vld [vmem:[%s1664_s5 + $0x10] sm:$0xff]  }
   0x9   :  { %v1277_v21 = vld [vmem:[%s1663_s3 + $0x18] sm:$0xff]   ;;  %v1416_v25 = vld [vmem:[%s1665_s2] ss:$0 sm:$0xff] }
   0xa   :  { %1141 = vmatmul.mubr.msk.bf16.vlgmr.msra.gmra.mrb[0].mxu0 %vm162_vm0, %v1259_v3  ;;  %1157 = vmatmul.mubr.msk.bf16.vlgmr.msra.gmra.mrb[0].mxu1 %vm162_vm0, %v1267_v6 }
   0xb   :  { %1144 = vmatprep.mubr.msk.bf16.mxu0 %vm162_vm0, %v1260_v4  ;;  %1160 = vmatprep.mubr.msk.bf16.mxu1 %vm162_vm0, %v1268_v7 }
   0xc   :  { %1173 = vmatpush3.bf16.msra.mxu1 %v1274_v12  ;;  %1213 = vmatpush3.bf16.msra.mxu0 %v1278_v22 }
   0xd   :  { %1174 = vmatprep.subr.bf16.mxu1 %v1275_v13  ;;  %1214 = vmatprep.subr.bf16.mxu0 %v1279_v23 }
  0x10   :  { %1175 = vmatpush3.bf16.msra.mxu1 %v1275_v13  ;;  %1215 = vmatpush3.bf16.msra.mxu0 %v1279_v23 }
  0x11   :  { %1176 = vmatprep.subr.bf16.mxu1 %v1276_v16  ;;  %1216 = vmatprep.subr.bf16.mxu0 %v1280_v24 }
  0x12   :  { %1145 = vmatmul.mubr.msk.bf16.gmra.mrb[4].mxu0 %vm162_vm0, %v1261_v8  ;;  %1161 = vmatmul.mubr.msk.bf16.gmra.mrb[4].mxu1 %vm162_vm0, %v1269_v10 }
  0x13   :  { %1148 = vmatprep.mubr.msk.bf16.mxu0 %vm162_vm0, %v1262_v9  ;;  %1164 = vmatprep.mubr.msk.bf16.mxu1 %vm162_vm0, %v1270_v11 }
  0x14   :  { %1177 = vmatpush3.bf16.msra.mxu1 %v1276_v16  ;;  %1217 = vmatpush3.bf16.msra.mxu0 %v1280_v24 }
  0x15   :  { %1178 = vmatprep.subr.bf16.mxu1 %v1277_v21 }
  0x18   :  { %1179 = vmatpush3.bf16.msra.mxu1 %v1277_v21 }
  0x1a   :  { %1149 = vmatmul.mubr.msk.bf16.gmra.mrb[8].mxu0 %vm162_vm0, %v1263_v14  ;;  %1165 = vmatmul.mubr.msk.bf16.gmra.mrb[8].mxu1 %vm162_vm0, %v1271_v17 }
  0x1b   :  { %1152 = vmatprep.mubr.msk.bf16.mxu0 %vm162_vm0, %v1264_v15  ;;  %1168 = vmatprep.mubr.msk.bf16.mxu1 %vm162_vm0, %v1272_v18 }
  0x22   :  { %1153 = vmatmul.mubr.msk.bf16.gmra.mrb[12].mxu0 %vm162_vm0, %v1265_v19  ;;  %1169 = vmatmul.mubr.msk.bf16.gmra.mrb[12].mxu1 %vm162_vm0, %v1273_v20 }
  0xdd   :  { %v1142_v26 = vpop.f32.mrb[0].mxu0  ;;  %v1158_v33 = vpop.f32.mrb[0].mxu1 }
  0xde   :  { %v254_v27 = vadd.f32 %v1142_v26, %v1416_v25  ;;  %v245_v28 = vpop.f32.mrb[1].mxu0  ;;  %v318_v35 = vadd.f32 %v1158_v33, %v1416_v25  ;;  %v309_v36 = vpop.f32.mrb[1].mxu1 }
  0xdf   :  { %v246_v29 = vadd.f32 %v1416_v25, %v245_v28  ;;  %v1143_v30 = vpop.f32.mrb[2].mxu0  ;;  %v310_v39 = vadd.f32 %v1416_v25, %v309_v36  ;;  %v1159_v40 = vpop.f32.mrb[2].mxu1 }
  0xe0   :  { %v257_v31 = vadd.f32 %v1143_v30, %v1416_v25  ;;  %v248_v32 = vpop.f32.mrb[3].mxu0  ;;  %v374_v37 = vmax.f32 %v254_v27, 0.0  ;;  %v390_v43 = vmax.f32 %v318_v35, 0.0  ;;  %v321_v44 = vadd.f32 %v1159_v40, %v1416_v25  ;;  %v312_v45 = vpop.f32.mrb[3].mxu1 }
  0xe1   :  { %v249_v34 = vadd.f32 %v1416_v25, %v248_v32  ;;  %v372_v41 = vmax.f32 %v246_v29, 0.0  ;;  %v388_v47 = vmax.f32 %v310_v39, 0.0  ;;  %v313_v48 = vadd.f32 %v1416_v25, %v312_v45 }
  0xe2   :  { %v375_v38 = vmax.f32 %v257_v31, 0.0  ;;  %v391_v51 = vmax.f32 %v321_v44, 0.0 }
  0xe3   :  { %v373_v42 = vmax.f32 %v249_v34, 0.0  ;;  %v389_v54 = vmax.f32 %v313_v48, 0.0 }
  0xe4   :  { %v405_v46 = vpack.c.bf16 %v375_v38, %v374_v37  ;;  %v1429_v57 = vpack.c.bf16 %v391_v51, %v390_v43 }
  0xe5   :  { %v404_v49 = vpack.c.bf16 %v373_v42, %v372_v41  ;;  %v1146_v50 = vpop.f32.mrb[4].mxu0  ;;  %v1433_v60 = vpack.c.bf16 %v389_v54, %v388_v47  ;;  %v1162_v61 = vpop.f32.mrb[4].mxu1 }
  0xe6   :  { %v270_v52 = vadd.f32 %v1146_v50, %v1416_v25  ;;  %v261_v53 = vpop.f32.mrb[5].mxu0  ;;  %v334_v63 = vadd.f32 %v1162_v61, %v1416_v25  ;;  %v325_v0 = vpop.f32.mrb[5].mxu1 }
  0xe7   :  { %v262_v55 = vadd.f32 %v1416_v25, %v261_v53  ;;  %v1147_v56 = vpop.f32.mrb[6].mxu0  ;;  %1180 = vmatprep.mubr.msk.bf16.mxu1 %vm459_vm1, %v404_v49  ;;  %v326_v3 = vadd.f32 %v1416_v25, %v325_v0  ;;  %v1163_v4 = vpop.f32.mrb[6].mxu1 }
  0xe8   :  { %v273_v58 = vadd.f32 %v1147_v56, %v1416_v25  ;;  %v264_v59 = vpop.f32.mrb[7].mxu0  ;;  %1181 = vmatmul.mubr.msk.bf16.vlgmr.msra.gmra.mrb[16].mxu1 %vm459_vm1, %v405_v46  ;;  %v378_v1 = vmax.f32 %v270_v52, 0.0  ;;  %v394_v7 = vmax.f32 %v334_v63, 0.0  ;;  %v337_v8 = vadd.f32 %v1163_v4, %v1416_v25  ;;  %v328_v9 = vpop.f32.mrb[7].mxu1 }
  0xe9   :  { %v265_v62 = vadd.f32 %v1416_v25, %v264_v59  ;;  %v376_v5 = vmax.f32 %v262_v55, 0.0  ;;  %v392_v11 = vmax.f32 %v326_v3, 0.0  ;;  %v329_v12 = vadd.f32 %v1416_v25, %v328_v9 }
  0xea   :  { %v379_v2 = vmax.f32 %v273_v58, 0.0  ;;  %v395_v15 = vmax.f32 %v337_v8, 0.0 }
  0xeb   :  { %v377_v6 = vmax.f32 %v265_v62, 0.0  ;;  %v393_v18 = vmax.f32 %v329_v12, 0.0 }
  0xec   :  { %v407_v10 = vpack.c.bf16 %v379_v2, %v378_v1  ;;  %v415_v21 = vpack.c.bf16 %v395_v15, %v394_v7 }
  0xed   :  { %v406_v13 = vpack.c.bf16 %v377_v6, %v376_v5  ;;  %v1150_v14 = vpop.f32.mrb[8].mxu0  ;;  %v414_v24 = vpack.c.bf16 %v393_v18, %v392_v11  ;;  %v1166_v26 = vpop.f32.mrb[8].mxu1 }
  0xee   :  { %v286_v16 = vadd.f32 %v1150_v14, %v1416_v25  ;;  %v277_v17 = vpop.f32.mrb[9].mxu0  ;;  %v350_v28 = vadd.f32 %v1166_v26, %v1416_v25  ;;  %v341_v29 = vpop.f32.mrb[9].mxu1 }
  0xef   :  { %v278_v19 = vadd.f32 %v1416_v25, %v277_v17  ;;  %v1151_v20 = vpop.f32.mrb[10].mxu0  ;;  %1184 = vmatprep.mubr.msk.bf16.mxu1 %vm459_vm1, %v406_v13  ;;  %v342_v32 = vadd.f32 %v1416_v25, %v341_v29  ;;  %v1167_v33 = vpop.f32.mrb[10].mxu1 }
  0xf0   :  { %v289_v22 = vadd.f32 %v1151_v20, %v1416_v25  ;;  %v280_v23 = vpop.f32.mrb[11].mxu0  ;;  %1185 = vmatmul.mubr.msk.bf16.gmra.mrb[20].mxu1 %vm459_vm1, %v407_v10  ;;  %v382_v30 = vmax.f32 %v286_v16, 0.0  ;;  %v398_v36 = vmax.f32 %v350_v28, 0.0  ;;  %v353_v37 = vadd.f32 %v1167_v33, %v1416_v25  ;;  %v344_v38 = vpop.f32.mrb[11].mxu1 }
  0xf1   :  { %v281_v27 = vadd.f32 %v1416_v25, %v280_v23  ;;  %v380_v34 = vmax.f32 %v278_v19, 0.0  ;;  %v396_v40 = vmax.f32 %v342_v32, 0.0  ;;  %v345_v41 = vadd.f32 %v1416_v25, %v344_v38 }
  0xf2   :  { %v383_v31 = vmax.f32 %v289_v22, 0.0  ;;  %v399_v44 = vmax.f32 %v353_v37, 0.0 }
  0xf3   :  { %v381_v35 = vmax.f32 %v281_v27, 0.0  ;;  %v397_v47 = vmax.f32 %v345_v41, 0.0 }
  0xf4   :  { %v409_v39 = vpack.c.bf16 %v383_v31, %v382_v30  ;;  %v417_v50 = vpack.c.bf16 %v399_v44, %v398_v36 }
  0xf5   :  { %v408_v42 = vpack.c.bf16 %v381_v35, %v380_v34  ;;  %v1154_v43 = vpop.f32.mrb[12].mxu0  ;;  %v416_v53 = vpack.c.bf16 %v397_v47, %v396_v40  ;;  %v1170_v54 = vpop.f32.mrb[12].mxu1 }
  0xf6   :  { %v302_v45 = vadd.f32 %v1154_v43, %v1416_v25  ;;  %v293_v46 = vpop.f32.mrb[13].mxu0  ;;  %v366_v56 = vadd.f32 %v1170_v54, %v1416_v25  ;;  %v357_v58 = vpop.f32.mrb[13].mxu1 }
  0xf7   :  { %v294_v48 = vadd.f32 %v1416_v25, %v293_v46  ;;  %v1155_v49 = vpop.f32.mrb[14].mxu0  ;;  %1188 = vmatprep.mubr.msk.bf16.mxu1 %vm459_vm1, %v408_v42  ;;  %v358_v62 = vadd.f32 %v1416_v25, %v357_v58  ;;  %v1171_v63 = vpop.f32.mrb[14].mxu1 }
  0xf8   :  { %v305_v51 = vadd.f32 %v1155_v49, %v1416_v25  ;;  %v296_v52 = vpop.f32.mrb[15].mxu0  ;;  %1189 = vmatmul.mubr.msk.bf16.gmra.mrb[24].mxu1 %vm459_vm1, %v409_v39  ;;  %v386_v59 = vmax.f32 %v302_v45, 0.0  ;;  %v402_v2 = vmax.f32 %v366_v56, 0.0  ;;  %v369_v3 = vadd.f32 %v1171_v63, %v1416_v25  ;;  %v360_v4 = vpop.f32.mrb[15].mxu1 }
  0xf9   :  { %v297_v55 = vadd.f32 %v1416_v25, %v296_v52  ;;  %v384_v0 = vmax.f32 %v294_v48, 0.0  ;;  %v400_v6 = vmax.f32 %v358_v62, 0.0  ;;  %v361_v7 = vadd.f32 %v1416_v25, %v360_v4  ;;  %v1281_v25 = vld [vmem:[%s1664_s5 + $0x18] sm:$0xff]  }
  0xfa   :  { %v387_v61 = vmax.f32 %v305_v51, 0.0  ;;  %v403_v9 = vmax.f32 %v369_v3, 0.0  ;;  %1218 = vmatprep.subr.bf16.mxu0 %v1281_v25 }
  0xfb   :  { %v385_v1 = vmax.f32 %v297_v55, 0.0  ;;  %v401_v10 = vmax.f32 %v361_v7, 0.0  ;;  %1219 = vmatpush3.bf16.msra.mxu0 %v1281_v25 }
  0xfc   :  { %v411_v5 = vpack.c.bf16 %v387_v61, %v386_v59  ;;  %v419_v11 = vpack.c.bf16 %v403_v9, %v402_v2 }
  0xfd   :  { %v410_v8 = vpack.c.bf16 %v385_v1, %v384_v0  ;;  %v418_v12 = vpack.c.bf16 %v401_v10, %v400_v6 }
  0xff   :  { %1192 = vmatprep.mubr.msk.bf16.mxu1 %vm459_vm1, %v410_v8 }
 0x100   :  { %1193 = vmatmul.mubr.msk.bf16.gmra.mrb[28].mxu1 %vm459_vm1, %v411_v5 }
 0x101   :  { %1196 = vmatprep.mubr.msk.bf16.mxu1 %vm459_vm1, %v1433_v60 }
 0x108   :  { %1197 = vmatmul.mubr.msk.bf16.gmra.mrb[32].mxu1 %vm459_vm1, %v1429_v57  ;;  %v1478_v57 = vld [vmem:[%s1666_s4] ss:$0 sm:$0xff] }
 0x109   :  { %1200 = vmatprep.mubr.msk.bf16.mxu1 %vm459_vm1, %v414_v24 }
 0x110   :  { %1201 = vmatmul.mubr.msk.bf16.gmra.mrb[36].mxu1 %vm459_vm1, %v415_v21 }
 0x111   :  { %1204 = vmatprep.mubr.msk.bf16.mxu1 %vm459_vm1, %v416_v53 }
 0x118   :  { %1205 = vmatmul.mubr.msk.bf16.gmra.mrb[40].mxu1 %vm459_vm1, %v417_v50 }
 0x119   :  { %1208 = vmatprep.mubr.msk.bf16.mxu1 %vm459_vm1, %v418_v12 }
 0x120   :  { %1209 = vmatmul.mubr.msk.bf16.gmra.mrb[44].mxu1 %vm459_vm1, %v419_v11 }
 0x1bb   :  { %v1182_v60 = vpop.f32.mrb[16].mxu1 }
 0x1bc   :  { %v551_v13 = vadd.f32 %v1182_v60, %v1478_v57  ;;  %v542_v14 = vpop.f32.mrb[17].mxu1 }
 0x1bd   :  { %v543_v15 = vadd.f32 %v1478_v57, %v542_v14  ;;  %v1183_v16 = vpop.f32.mrb[18].mxu1 }
 0x1be   :  { %v554_v17 = vadd.f32 %v1183_v16, %v1478_v57  ;;  %v545_v18 = vpop.f32.mrb[19].mxu1  ;;  %v671_v20 = vmax.f32 %v551_v13, 0.0 }
 0x1bf   :  { %v546_v19 = vadd.f32 %v1478_v57, %v545_v18  ;;  %v669_v22 = vmax.f32 %v543_v15, 0.0 }
 0x1c0   :  { %v672_v21 = vmax.f32 %v554_v17, 0.0 }
 0x1c1   :  { %v670_v23 = vmax.f32 %v546_v19, 0.0 }
 0x1c2   :  { %v702_v24 = vpack.c.bf16 %v672_v21, %v671_v20 }
 0x1c3   :  { %v701_v26 = vpack.c.bf16 %v670_v23, %v669_v22  ;;  %v1186_v27 = vpop.f32.mrb[20].mxu1 }
 0x1c4   :  { %v567_v28 = vadd.f32 %v1186_v27, %v1478_v57  ;;  %v558_v29 = vpop.f32.mrb[21].mxu1 }
 0x1c5   :  { %v559_v30 = vadd.f32 %v1478_v57, %v558_v29  ;;  %v1187_v31 = vpop.f32.mrb[22].mxu1  ;;  %1220 = vmatprep.mubr.msk.bf16.mxu0 %vm459_vm1, %v701_v26 }
 0x1c6   :  { %v570_v32 = vadd.f32 %v1187_v31, %v1478_v57  ;;  %v561_v33 = vpop.f32.mrb[23].mxu1  ;;  %1221 = vmatmul.mubr.msk.bf16.vlgmr.msra.gmra.mrb[16].mxu0 %vm459_vm1, %v702_v24  ;;  %v675_v35 = vmax.f32 %v567_v28, 0.0 }
 0x1c7   :  { %v562_v34 = vadd.f32 %v1478_v57, %v561_v33  ;;  %v673_v37 = vmax.f32 %v559_v30, 0.0 }
 0x1c8   :  { %v676_v36 = vmax.f32 %v570_v32, 0.0 }
 0x1c9   :  { %v674_v38 = vmax.f32 %v562_v34, 0.0 }
 0x1ca   :  { %v704_v39 = vpack.c.bf16 %v676_v36, %v675_v35 }
 0x1cb   :  { %v703_v40 = vpack.c.bf16 %v674_v38, %v673_v37  ;;  %v1190_v41 = vpop.f32.mrb[24].mxu1 }
 0x1cc   :  { %v583_v42 = vadd.f32 %v1190_v41, %v1478_v57  ;;  %v574_v43 = vpop.f32.mrb[25].mxu1 }
 0x1cd   :  { %v575_v44 = vadd.f32 %v1478_v57, %v574_v43  ;;  %v1191_v45 = vpop.f32.mrb[26].mxu1  ;;  %1224 = vmatprep.mubr.msk.bf16.mxu0 %vm459_vm1, %v703_v40 }
 0x1ce   :  { %v586_v46 = vadd.f32 %v1191_v45, %v1478_v57  ;;  %v577_v47 = vpop.f32.mrb[27].mxu1  ;;  %1225 = vmatmul.mubr.msk.bf16.gmra.mrb[20].mxu0 %vm459_vm1, %v704_v39  ;;  %v679_v49 = vmax.f32 %v583_v42, 0.0 }
 0x1cf   :  { %v578_v48 = vadd.f32 %v1478_v57, %v577_v47  ;;  %v677_v51 = vmax.f32 %v575_v44, 0.0 }
 0x1d0   :  { %v680_v50 = vmax.f32 %v586_v46, 0.0 }
 0x1d1   :  { %v678_v52 = vmax.f32 %v578_v48, 0.0 }
 0x1d2   :  { %v706_v53 = vpack.c.bf16 %v680_v50, %v679_v49 }
 0x1d3   :  { %v705_v54 = vpack.c.bf16 %v678_v52, %v677_v51  ;;  %v1194_v55 = vpop.f32.mrb[28].mxu1 }
 0x1d4   :  { %v599_v56 = vadd.f32 %v1194_v55, %v1478_v57  ;;  %v590_v58 = vpop.f32.mrb[29].mxu1 }
 0x1d5   :  { %v591_v59 = vadd.f32 %v1478_v57, %v590_v58  ;;  %v1195_v61 = vpop.f32.mrb[30].mxu1  ;;  %1228 = vmatprep.mubr.msk.bf16.mxu0 %vm459_vm1, %v705_v54 }
 0x1d6   :  { %v602_v62 = vadd.f32 %v1195_v61, %v1478_v57  ;;  %v593_v63 = vpop.f32.mrb[31].mxu1  ;;  %1229 = vmatmul.mubr.msk.bf16.gmra.mrb[24].mxu0 %vm459_vm1, %v706_v53  ;;  %v683_v1 = vmax.f32 %v599_v56, 0.0 }
 0x1d7   :  { %v594_v0 = vadd.f32 %v1478_v57, %v593_v63  ;;  %v681_v3 = vmax.f32 %v591_v59, 0.0 }
 0x1d8   :  { %v684_v2 = vmax.f32 %v602_v62, 0.0 }
 0x1d9   :  { %v682_v4 = vmax.f32 %v594_v0, 0.0  ;;  %v1531_v0 = vld [vmem:[%s1667_s6] ss:$0 sm:$0xff] }
 0x1da   :  { %v708_v5 = vpack.c.bf16 %v684_v2, %v683_v1 }
 0x1db   :  { %v707_v6 = vpack.c.bf16 %v682_v4, %v681_v3  ;;  %v1198_v7 = vpop.f32.mrb[32].mxu1 }
 0x1dc   :  { %v615_v8 = vadd.f32 %v1198_v7, %v1478_v57  ;;  %v606_v9 = vpop.f32.mrb[33].mxu1 }
 0x1dd   :  { %v607_v10 = vadd.f32 %v1478_v57, %v606_v9  ;;  %v1199_v11 = vpop.f32.mrb[34].mxu1  ;;  %1232 = vmatprep.mubr.msk.bf16.mxu0 %vm459_vm1, %v707_v6 }
 0x1de   :  { %v618_v12 = vadd.f32 %v1199_v11, %v1478_v57  ;;  %v609_v25 = vpop.f32.mrb[35].mxu1  ;;  %1233 = vmatmul.mubr.msk.bf16.gmra.mrb[28].mxu0 %vm459_vm1, %v708_v5  ;;  %v687_v13 = vmax.f32 %v615_v8, 0.0 }
 0x1df   :  { %v610_v60 = vadd.f32 %v1478_v57, %v609_v25  ;;  %v685_v15 = vmax.f32 %v607_v10, 0.0 }
 0x1e0   :  { %v688_v14 = vmax.f32 %v618_v12, 0.0 }
 0x1e1   :  { %v686_v16 = vmax.f32 %v610_v60, 0.0 }
 0x1e2   :  { %v710_v17 = vpack.c.bf16 %v688_v14, %v687_v13 }
 0x1e3   :  { %v709_v18 = vpack.c.bf16 %v686_v16, %v685_v15  ;;  %v1202_v19 = vpop.f32.mrb[36].mxu1 }
 0x1e4   :  { %v631_v20 = vadd.f32 %v1202_v19, %v1478_v57  ;;  %v622_v21 = vpop.f32.mrb[37].mxu1 }
 0x1e5   :  { %v623_v22 = vadd.f32 %v1478_v57, %v622_v21  ;;  %v1203_v23 = vpop.f32.mrb[38].mxu1  ;;  %1236 = vmatprep.mubr.msk.bf16.mxu0 %vm459_vm1, %v709_v18 }
 0x1e6   :  { %v634_v24 = vadd.f32 %v1203_v23, %v1478_v57  ;;  %v625_v26 = vpop.f32.mrb[39].mxu1  ;;  %1237 = vmatmul.mubr.msk.bf16.gmra.mrb[32].mxu0 %vm459_vm1, %v710_v17  ;;  %v691_v28 = vmax.f32 %v631_v20, 0.0 }
 0x1e7   :  { %v626_v27 = vadd.f32 %v1478_v57, %v625_v26  ;;  %v689_v30 = vmax.f32 %v623_v22, 0.0 }
 0x1e8   :  { %v692_v29 = vmax.f32 %v634_v24, 0.0 }
 0x1e9   :  { %v690_v31 = vmax.f32 %v626_v27, 0.0 }
 0x1ea   :  { %v712_v32 = vpack.c.bf16 %v692_v29, %v691_v28 }
 0x1eb   :  { %v711_v33 = vpack.c.bf16 %v690_v31, %v689_v30  ;;  %v1206_v34 = vpop.f32.mrb[40].mxu1 }
 0x1ec   :  { %v647_v35 = vadd.f32 %v1206_v34, %v1478_v57  ;;  %v638_v36 = vpop.f32.mrb[41].mxu1 }
 0x1ed   :  { %v639_v37 = vadd.f32 %v1478_v57, %v638_v36  ;;  %v1207_v38 = vpop.f32.mrb[42].mxu1  ;;  %1240 = vmatprep.mubr.msk.bf16.mxu0 %vm459_vm1, %v711_v33 }
 0x1ee   :  { %v650_v39 = vadd.f32 %v1207_v38, %v1478_v57  ;;  %v641_v40 = vpop.f32.mrb[43].mxu1  ;;  %1241 = vmatmul.mubr.msk.bf16.gmra.mrb[36].mxu0 %vm459_vm1, %v712_v32  ;;  %v695_v42 = vmax.f32 %v647_v35, 0.0 }
 0x1ef   :  { %v642_v41 = vadd.f32 %v1478_v57, %v641_v40  ;;  %v693_v44 = vmax.f32 %v639_v37, 0.0 }
 0x1f0   :  { %v696_v43 = vmax.f32 %v650_v39, 0.0 }
 0x1f1   :  { %v694_v45 = vmax.f32 %v642_v41, 0.0 }
 0x1f2   :  { %v714_v46 = vpack.c.bf16 %v696_v43, %v695_v42 }
 0x1f3   :  { %v713_v47 = vpack.c.bf16 %v694_v45, %v693_v44  ;;  %v1210_v48 = vpop.f32.mrb[44].mxu1 }
 0x1f4   :  { %v663_v49 = vadd.f32 %v1210_v48, %v1478_v57  ;;  %v654_v50 = vpop.f32.mrb[45].mxu1 }
 0x1f5   :  { %v655_v51 = vadd.f32 %v1478_v57, %v654_v50  ;;  %v1211_v52 = vpop.f32.mrb[46].mxu1  ;;  %1244 = vmatprep.mubr.msk.bf16.mxu0 %vm459_vm1, %v713_v47 }
 0x1f6   :  { %v666_v53 = vadd.f32 %v1211_v52, %v1478_v57  ;;  %v657_v54 = vpop.f32.mrb[47].mxu1  ;;  %1245 = vmatmul.mubr.msk.bf16.gmra.mrb[40].mxu0 %vm459_vm1, %v714_v46  ;;  %v699_v56 = vmax.f32 %v663_v49, 0.0 }
 0x1f7   :  { %v658_v55 = vadd.f32 %v1478_v57, %v657_v54  ;;  %v697_v59 = vmax.f32 %v655_v51, 0.0 }
 0x1f8   :  { %v700_v58 = vmax.f32 %v666_v53, 0.0 }
 0x1f9   :  { %v698_v61 = vmax.f32 %v658_v55, 0.0 }
 0x1fa   :  { %v716_v62 = vpack.c.bf16 %v700_v58, %v699_v56 }
 0x1fb   :  { %v715_v63 = vpack.c.bf16 %v698_v61, %v697_v59 }
 0x1fd   :  { %1248 = vmatprep.mubr.msk.bf16.mxu0 %vm459_vm1, %v715_v63 }
 0x1fe   :  { %1249 = vmatmul.mubr.msk.bf16.gmra.mrb[44].mxu0 %vm459_vm1, %v716_v62 }
 0x299   :  { %v1222_v1 = vpop.f32.mrb[16].mxu0 }
 0x29a   :  { %v847_v2 = vadd.f32 %v1222_v1, %v1531_v0  ;;  %v838_v3 = vpop.f32.mrb[17].mxu0 }
 0x29b   :  { %v839_v57 = vadd.f32 %v1531_v0, %v838_v3  ;;  %v1223_v4 = vpop.f32.mrb[18].mxu0 }
 0x29c   :  { %967 = vst [vmem:[%s1668_s7 + $0x10] sm:$0xff] %v847_v2  ;;  %v850_v5 = vadd.f32 %v1223_v4, %v1531_v0  ;;  %v841_v6 = vpop.f32.mrb[19].mxu0 }
 0x29d   :  { %965 = vst [vmem:[%s1668_s7] sm:$0xff] %v839_v57  ;;  %v842_v7 = vadd.f32 %v1531_v0, %v841_v6 }
 0x29e   :  { %968 = vst [vmem:[%s1668_s7 + $0x18] sm:$0xff] %v850_v5 }
 0x29f   :  { %966 = vst [vmem:[%s1668_s7 + $0x8] sm:$0xff] %v842_v7 }
 0x2a1   :  { %v1226_v8 = vpop.f32.mrb[20].mxu0 }
 0x2a2   :  { %v863_v9 = vadd.f32 %v1226_v8, %v1531_v0  ;;  %v854_v10 = vpop.f32.mrb[21].mxu0 }
 0x2a3   :  { %v855_v11 = vadd.f32 %v1531_v0, %v854_v10  ;;  %v1227_v12 = vpop.f32.mrb[22].mxu0 }
 0x2a4   :  { %971 = vst [vmem:[%s1668_s7 + $0x30] sm:$0xff] %v863_v9  ;;  %v866_v25 = vadd.f32 %v1227_v12, %v1531_v0  ;;  %v857_v60 = vpop.f32.mrb[23].mxu0 }
 0x2a5   :  { %969 = vst [vmem:[%s1668_s7 + $0x20] sm:$0xff] %v855_v11  ;;  %v858_v13 = vadd.f32 %v1531_v0, %v857_v60 }
 0x2a6   :  { %972 = vst [vmem:[%s1668_s7 + $0x38] sm:$0xff] %v866_v25 }
 0x2a7   :  { %970 = vst [vmem:[%s1668_s7 + $0x28] sm:$0xff] %v858_v13 }
 0x2a9   :  { %v1230_v14 = vpop.f32.mrb[24].mxu0 }
 0x2aa   :  { %v879_v15 = vadd.f32 %v1230_v14, %v1531_v0  ;;  %v870_v16 = vpop.f32.mrb[25].mxu0 }
 0x2ab   :  { %v871_v17 = vadd.f32 %v1531_v0, %v870_v16  ;;  %v1231_v18 = vpop.f32.mrb[26].mxu0 }
 0x2ac   :  { %975 = vst [vmem:[%s1668_s7 + $0x50] sm:$0xff] %v879_v15  ;;  %v882_v19 = vadd.f32 %v1231_v18, %v1531_v0  ;;  %v873_v20 = vpop.f32.mrb[27].mxu0 }
 0x2ad   :  { %973 = vst [vmem:[%s1668_s7 + $0x40] sm:$0xff] %v871_v17  ;;  %v874_v21 = vadd.f32 %v1531_v0, %v873_v20 }
 0x2ae   :  { %976 = vst [vmem:[%s1668_s7 + $0x58] sm:$0xff] %v882_v19 }
 0x2af   :  { %974 = vst [vmem:[%s1668_s7 + $0x48] sm:$0xff] %v874_v21 }
 0x2b1   :  { %v1234_v22 = vpop.f32.mrb[28].mxu0 }
 0x2b2   :  { %v895_v23 = vadd.f32 %v1234_v22, %v1531_v0  ;;  %v886_v24 = vpop.f32.mrb[29].mxu0 }
 0x2b3   :  { %v887_v26 = vadd.f32 %v1531_v0, %v886_v24  ;;  %v1235_v27 = vpop.f32.mrb[30].mxu0 }
 0x2b4   :  { %979 = vst [vmem:[%s1668_s7 + $0x70] sm:$0xff] %v895_v23  ;;  %v898_v28 = vadd.f32 %v1235_v27, %v1531_v0  ;;  %v889_v29 = vpop.f32.mrb[31].mxu0 }
 0x2b5   :  { %977 = vst [vmem:[%s1668_s7 + $0x60] sm:$0xff] %v887_v26  ;;  %v890_v30 = vadd.f32 %v1531_v0, %v889_v29 }
 0x2b6   :  { %980 = vst [vmem:[%s1668_s7 + $0x78] sm:$0xff] %v898_v28 }
 0x2b7   :  { %978 = vst [vmem:[%s1668_s7 + $0x68] sm:$0xff] %v890_v30 }
 0x2b9   :  { %v1238_v31 = vpop.f32.mrb[32].mxu0 }
 0x2ba   :  { %v911_v32 = vadd.f32 %v1238_v31, %v1531_v0  ;;  %v902_v33 = vpop.f32.mrb[33].mxu0 }
 0x2bb   :  { %v903_v34 = vadd.f32 %v1531_v0, %v902_v33  ;;  %v1239_v35 = vpop.f32.mrb[34].mxu0 }
 0x2bc   :  { %983 = vst [vmem:[%s1668_s7 + $0x90] sm:$0xff] %v911_v32  ;;  %v914_v36 = vadd.f32 %v1239_v35, %v1531_v0  ;;  %v905_v37 = vpop.f32.mrb[35].mxu0 }
 0x2bd   :  { %981 = vst [vmem:[%s1668_s7 + $0x80] sm:$0xff] %v903_v34  ;;  %v906_v38 = vadd.f32 %v1531_v0, %v905_v37 }
 0x2be   :  { %984 = vst [vmem:[%s1668_s7 + $0x98] sm:$0xff] %v914_v36 }
 0x2bf   :  { %982 = vst [vmem:[%s1668_s7 + $0x88] sm:$0xff] %v906_v38 }
 0x2c1   :  { %v1242_v39 = vpop.f32.mrb[36].mxu0 }
 0x2c2   :  { %v927_v40 = vadd.f32 %v1242_v39, %v1531_v0  ;;  %v918_v41 = vpop.f32.mrb[37].mxu0 }
 0x2c3   :  { %v919_v42 = vadd.f32 %v1531_v0, %v918_v41  ;;  %v1243_v43 = vpop.f32.mrb[38].mxu0 }
 0x2c4   :  { %987 = vst [vmem:[%s1668_s7 + $0xb0] sm:$0xff] %v927_v40  ;;  %v930_v44 = vadd.f32 %v1243_v43, %v1531_v0  ;;  %v921_v45 = vpop.f32.mrb[39].mxu0 }
 0x2c5   :  { %985 = vst [vmem:[%s1668_s7 + $0xa0] sm:$0xff] %v919_v42  ;;  %v922_v46 = vadd.f32 %v1531_v0, %v921_v45 }
 0x2c6   :  { %988 = vst [vmem:[%s1668_s7 + $0xb8] sm:$0xff] %v930_v44 }
 0x2c7   :  { %986 = vst [vmem:[%s1668_s7 + $0xa8] sm:$0xff] %v922_v46 }
 0x2c9   :  { %v1246_v47 = vpop.f32.mrb[40].mxu0 }
 0x2ca   :  { %v943_v48 = vadd.f32 %v1246_v47, %v1531_v0  ;;  %v934_v49 = vpop.f32.mrb[41].mxu0 }
 0x2cb   :  { %v935_v50 = vadd.f32 %v1531_v0, %v934_v49  ;;  %v1247_v51 = vpop.f32.mrb[42].mxu0 }
 0x2cc   :  { %991 = vst [vmem:[%s1668_s7 + $0xd0] sm:$0xff] %v943_v48  ;;  %v946_v52 = vadd.f32 %v1247_v51, %v1531_v0  ;;  %v937_v53 = vpop.f32.mrb[43].mxu0 }
 0x2cd   :  { %989 = vst [vmem:[%s1668_s7 + $0xc0] sm:$0xff] %v935_v50  ;;  %v938_v54 = vadd.f32 %v1531_v0, %v937_v53 }
 0x2ce   :  { %992 = vst [vmem:[%s1668_s7 + $0xd8] sm:$0xff] %v946_v52 }
 0x2cf   :  { %990 = vst [vmem:[%s1668_s7 + $0xc8] sm:$0xff] %v938_v54 }
 0x2d1   :  { %v1250_v55 = vpop.f32.mrb[44].mxu0 }
 0x2d2   :  { %v959_v56 = vadd.f32 %v1250_v55, %v1531_v0  ;;  %v950_v58 = vpop.f32.mrb[45].mxu0 }
 0x2d3   :  { %v951_v59 = vadd.f32 %v1531_v0, %v950_v58  ;;  %v1251_v61 = vpop.f32.mrb[46].mxu0 }
 0x2d4   :  { %995 = vst [vmem:[%s1668_s7 + $0xf0] sm:$0xff] %v959_v56  ;;  %v962_v62 = vadd.f32 %v1251_v61, %v1531_v0  ;;  %v953_v63 = vpop.f32.mrb[47].mxu0 }
 0x2d5   :  { %993 = vst [vmem:[%s1668_s7 + $0xe0] sm:$0xff] %v951_v59  ;;  %v954_v1 = vadd.f32 %v1531_v0, %v953_v63 }
 0x2d6   :  { %996 = vst [vmem:[%s1668_s7 + $0xf8] sm:$0xff] %v962_v62 }
 0x2d7   :  { %994 = vst [vmem:[%s1668_s7 + $0xe8] sm:$0xff] %v954_v1 }

</bundles_post_ra>
